<compile_context>
chip_gen: v5e
topology: v5e:2x2
jax: 0.10.0
libtpu: 0.0.40
codegen_flags: <defaults>
</compile_context>

<pallas_src>
import jax
import jax.numpy as jnp
from jax.experimental import pallas as pl
from jax.experimental.pallas import tpu as pltpu

EPS = 1e-5  # nn.InstanceNorm1d default eps


def conv_block_kernel(x_ref, w_ref, b_ref, o_ref):
    """One batch element per grid step.  NCL layout: (C, L) tiles in VMEM."""
    x = x_ref[0]                                                  # (Cin, L)
    cin, L = x.shape

    # Shifted views of the input (zero padding=1 at both ends), built on the
    # small (Cin, L) input rather than padding/slicing a large conv output.
    zero_col = jnp.zeros((cin, 1), dtype=x.dtype)
    x_prev = jnp.concatenate([zero_col, x[:, :L - 1]], axis=1)    # x[:, l-1]
    x_next = jnp.concatenate([x[:, 1:], zero_col], axis=1)        # x[:, l+1]

    # Fold the 3 taps into the contraction dim: a single MXU matmul.
    x_stack = jnp.concatenate([x_prev, x, x_next], axis=0)        # (3*Cin, L)
    c = jnp.dot(w_ref[...], x_stack,
                preferred_element_type=jnp.float32) + b_ref[...]  # (Cout, L)

    # InstanceNorm1d (affine=False, biased variance) over L -- lane reduction,
    # single pass: sum and sum-of-squares.
    inv_l = 1.0 / L
    s1 = jnp.sum(c, axis=1, keepdims=True)
    s2 = jnp.sum(c * c, axis=1, keepdims=True)
    mean = s1 * inv_l
    var = jnp.maximum(s2 * inv_l - mean * mean, 0.0)
    normed = (c - mean) * jax.lax.rsqrt(var + EPS)

    # ReLU
    o_ref[0] = jnp.maximum(normed, 0.0)


@jax.jit
def conv_block(x_ncl, w_conv, b_conv):
    """x_ncl: (N, Cin, L); w_conv: (Cout, Cin, 3); b_conv: (Cout,).

    Returns (N, Cout, L) -- same NCL layout as the PyTorch module, with no
    wrapper-side transposes.
    """
    N, Cin, L = x_ncl.shape
    Cout = w_conv.shape[0]

    # Pack the 3 taps into one (Cout, 3*Cin) matmul weight, ordered to match
    # the [x_prev ; x ; x_next] sublane stacking inside the kernel.
    w_all = jnp.concatenate(
        [w_conv[:, :, 0], w_conv[:, :, 1], w_conv[:, :, 2]],
        axis=1).astype(jnp.float32)                               # (Cout, 3Cin)
    b_col = b_conv.reshape(Cout, 1).astype(jnp.float32)           # (Cout, 1)
    x = x_ncl.astype(jnp.float32)

    return pl.pallas_call(
        conv_block_kernel,
        out_shape=jax.ShapeDtypeStruct((N, Cout, L), jnp.float32),
        grid=(N,),
        in_specs=[
            pl.BlockSpec((1, Cin, L), lambda n: (n, 0, 0)),
            pl.BlockSpec((Cout, 3 * Cin), lambda n: (0, 0)),
            pl.BlockSpec((Cout, 1), lambda n: (0, 0)),
        ],
        out_specs=pl.BlockSpec((1, Cout, L), lambda n: (n, 0, 0)),
        compiler_params=pltpu.CompilerParams(
            dimension_semantics=("parallel",)),
    )(x, w_all, b_col)


def reference(x_ncl, w_conv, b_conv):
    """Pure-JAX reference of the PyTorch forward (NCL layout)."""
    xp = jnp.pad(x_ncl, ((0, 0), (0, 0), (1, 1)))
    c = (jnp.einsum('oc,ncl->nol', w_conv[:, :, 0], xp[:, :, :-2])
         + jnp.einsum('oc,ncl->nol', w_conv[:, :, 1], xp[:, :, 1:-1])
         + jnp.einsum('oc,ncl->nol', w_conv[:, :, 2], xp[:, :, 2:])
         + b_conv[None, :, None])
    mean = jnp.mean(c, axis=2, keepdims=True)
    var = jnp.mean((c - mean) ** 2, axis=2, keepdims=True)
    return jnp.maximum((c - mean) * jax.lax.rsqrt(var + EPS), 0.0)


if __name__ == "__main__":
    N, Cin, Cout, L = 2, 8, 4, 16

    key = jax.random.PRNGKey(0)
    kx, kw, kb = jax.random.split(key, 3)

    x = jax.random.normal(kx, (N, Cin, L), dtype=jnp.float32)          # NCL
    # Conv1d(in=Cin, out=Cout, k=3): weight (Cout, Cin, 3), bias (Cout,)
    w_conv = 0.1 * jax.random.normal(kw, (Cout, Cin, 3), dtype=jnp.float32)
    b_conv = 0.1 * jax.random.normal(kb, (Cout,), dtype=jnp.float32)

    out = conv_block(x, w_conv, b_conv)
    out = jax.block_until_ready(out)

    ref = reference(x, w_conv, b_conv)
    assert out.shape == (N, Cout, L), out.shape
    assert jnp.allclose(out, ref, rtol=1e-3, atol=1e-3), float(
        jnp.max(jnp.abs(out - ref)))

    print("KERNEL_OK")
</pallas_src>

<mosaic_0001>
module attributes {stable_mosaic.version = 11 : i64} {
  func.func @conv_block_kernel(%arg0: i32, %arg1: memref<1x8x16xf32, #tpu.memory_space<vmem>>, %arg2: memref<4x24xf32, #tpu.memory_space<vmem>>, %arg3: memref<4x1xf32, #tpu.memory_space<vmem>>, %arg4: memref<1x4x16xf32, #tpu.memory_space<vmem>>) attributes {dimension_semantics = [#tpu.dimension_semantics<parallel>], iteration_bounds = array<i64: 2>, scalar_prefetch = 0 : i64, scratch_operands = 0 : i64, tpu.core_type = #tpu.core_type<tc>, window_params = [{transform_indices = @transform_0, window_bounds = array<i64: 1, 8, 16>}, {pipeline_mode = #tpu.pipeline_mode<synchronous>, transform_indices = @transform_1, window_bounds = array<i64: 4, 24>}, {pipeline_mode = #tpu.pipeline_mode<synchronous>, transform_indices = @transform_2, window_bounds = array<i64: 4, 1>}, {transform_indices = @transform_3, window_bounds = array<i64: 1, 4, 16>}]} {
    %c0 = arith.constant 0 : index
    %c0_0 = arith.constant 0 : index
    %c0_1 = arith.constant 0 : index
    %0 = vector.load %arg1[%c0, %c0_0, %c0_1] : memref<1x8x16xf32, #tpu.memory_space<vmem>>, vector<1x8x16xf32>
    %1 = vector.shape_cast %0 : vector<1x8x16xf32> to vector<8x16xf32>
    %cst = arith.constant 0.000000e+00 : f32
    %2 = vector.broadcast %cst : f32 to vector<8x1xf32>
    %3 = vector.extract_strided_slice %1 {offsets = [0, 0], sizes = [8, 15], strides = [1, 1]} : vector<8x16xf32> to vector<8x15xf32>
    %4 = tpu.concatenate %2, %3 in 1 : vector<8x1xf32>, vector<8x15xf32> -> vector<8x16xf32>
    %5 = vector.extract_strided_slice %1 {offsets = [0, 1], sizes = [8, 15], strides = [1, 1]} : vector<8x16xf32> to vector<8x15xf32>
    %6 = tpu.concatenate %5, %2 in 1 : vector<8x15xf32>, vector<8x1xf32> -> vector<8x16xf32>
    %7 = tpu.concatenate %4, %1, %6 in 0 : vector<8x16xf32>, vector<8x16xf32>, vector<8x16xf32> -> vector<24x16xf32>
    %c0_2 = arith.constant 0 : index
    %c0_3 = arith.constant 0 : index
    %8 = vector.load %arg2[%c0_2, %c0_3] : memref<4x24xf32, #tpu.memory_space<vmem>>, vector<4x24xf32>
    %cst_4 = arith.constant dense<0.000000e+00> : vector<4x16xf32>
    %9 = tpu.matmul %8, %7, %cst_4 {dimension_numbers = #tpu.dot_dimension_numbers<[1], [0], [0], [1], [0, 0, 1, 1], [], []>} : vector<4x24xf32>, vector<24x16xf32>, vector<4x16xf32> -> vector<4x16xf32>
    %c0_5 = arith.constant 0 : index
    %c0_6 = arith.constant 0 : index
    %10 = vector.load %arg3[%c0_5, %c0_6] : memref<4x1xf32, #tpu.memory_space<vmem>>, vector<4x1xf32>
    %11 = vector.broadcast %10 : vector<4x1xf32> to vector<4x16xf32>
    %12 = arith.addf %9, %11 : vector<4x16xf32>
    %cst_7 = arith.constant dense<0.000000e+00> : vector<4xf32>
    %13 = vector.multi_reduction <add>, %12, %cst_7 [1] : vector<4x16xf32> to vector<4xf32>
    %14 = vector.shape_cast %13 : vector<4xf32> to vector<4x1xf32>
    %15 = arith.mulf %12, %12 : vector<4x16xf32>
    %cst_8 = arith.constant dense<0.000000e+00> : vector<4xf32>
    %16 = vector.multi_reduction <add>, %15, %cst_8 [1] : vector<4x16xf32> to vector<4xf32>
    %17 = vector.shape_cast %16 : vector<4xf32> to vector<4x1xf32>
    %cst_9 = arith.constant 6.250000e-02 : f32
    %18 = vector.broadcast %cst_9 : f32 to vector<4x1xf32>
    %19 = arith.mulf %14, %18 : vector<4x1xf32>
    %cst_10 = arith.constant 6.250000e-02 : f32
    %20 = vector.broadcast %cst_10 : f32 to vector<4x1xf32>
    %21 = arith.mulf %17, %20 : vector<4x1xf32>
    %22 = arith.mulf %19, %19 : vector<4x1xf32>
    %23 = arith.subf %21, %22 : vector<4x1xf32>
    %cst_11 = arith.constant 0.000000e+00 : f32
    %24 = vector.broadcast %cst_11 : f32 to vector<4x1xf32>
    %25 = arith.maximumf %23, %24 : vector<4x1xf32>
    %26 = vector.broadcast %19 : vector<4x1xf32> to vector<4x16xf32>
    %27 = arith.subf %12, %26 : vector<4x16xf32>
    %cst_12 = arith.constant 9.99999974E-6 : f32
    %28 = vector.broadcast %cst_12 : f32 to vector<4x1xf32>
    %29 = arith.addf %25, %28 : vector<4x1xf32>
    %30 = math.rsqrt %29 : vector<4x1xf32>
    %31 = vector.broadcast %30 : vector<4x1xf32> to vector<4x16xf32>
    %32 = arith.mulf %27, %31 : vector<4x16xf32>
    %cst_13 = arith.constant 0.000000e+00 : f32
    %33 = vector.broadcast %cst_13 : f32 to vector<4x16xf32>
    %34 = arith.maximumf %32, %33 : vector<4x16xf32>
    %c0_14 = arith.constant 0 : index
    %c0_15 = arith.constant 0 : index
    %c0_16 = arith.constant 0 : index
    %35 = vector.load %arg4[%c0_14, %c0_15, %c0_16] : memref<1x4x16xf32, #tpu.memory_space<vmem>>, vector<1x4x16xf32>
    %36 = vector.shape_cast %35 : vector<1x4x16xf32> to vector<4x16xf32>
    %37 = vector.shape_cast %34 : vector<4x16xf32> to vector<1x4x16xf32>
    tpu.vector_store %arg4[%c0_14, %c0_15, %c0_16], %37 {strides = array<i32>} : memref<1x4x16xf32, #tpu.memory_space<vmem>>, vector<1x4x16xf32>,
    return
  }
  func.func @transform_0(%arg0: i32) -> (i32, i32, i32) {
    %c0_i32 = arith.constant 0 : i32
    %c0_i32_0 = arith.constant 0 : i32
    %c0_i32_1 = arith.constant 0 : i32
    return %arg0, %c0_i32, %c0_i32_0 : i32, i32, i32
  }
  func.func @transform_1(%arg0: i32) -> (i32, i32) {
    %c0_i32 = arith.constant 0 : i32
    %c0_i32_0 = arith.constant 0 : i32
    %c0_i32_1 = arith.constant 0 : i32
    return %c0_i32, %c0_i32_0 : i32, i32
  }
  func.func @transform_2(%arg0: i32) -> (i32, i32) {
    %c0_i32 = arith.constant 0 : i32
    %c0_i32_0 = arith.constant 0 : i32
    %c0_i32_1 = arith.constant 0 : i32
    return %c0_i32, %c0_i32_0 : i32, i32
  }
  func.func @transform_3(%arg0: i32) -> (i32, i32, i32) {
    %c0_i32 = arith.constant 0 : i32
    %c0_i32_0 = arith.constant 0 : i32
    %c0_i32_1 = arith.constant 0 : i32
    return %arg0, %c0_i32, %c0_i32_0 : i32, i32, i32
  }
}

</mosaic_0001>

<bundles_post_ra>
// kernel: conv_block.1
= control target key start
LH: loop header
LB: loop body
LE: loop exit
PB: predicated region body
PF: predicated region fallthrough
CT: control target
= control target key end

     0   :  { %8 = vsyncpa [#allocation3], 0  ;;  %s553_s0 = inlined_call_operand.vmem [shape: f32[2,8,16], index: 0, kind: input, shape index: {}]   ;;  %s554_s1 = inlined_call_operand.vmem [shape: f32[4,24], index: 1, kind: input, shape index: {}]   ;;  %s555_s2 = inlined_call_operand.vmem [shape: f32[4,1], index: 2, kind: input, shape index: {}]   ;;  %s556_s3 = inlined_call_operand.hbm [shape: f32[2,4,16], index: 3, kind: output, shape index: {}]  }
   0x1   :  { %10 = vsyncpa [#allocation3 + $0x1], 0  ;;  %s459_s12 = smov 0   ;;  %s461_s13 = smov 0  }
   0x2   :  { %s463_s14 = smov 0   ;;  %s465_s15 = smov 0  }
   0x3 LB: > { %s480_s16 = sadd.s32 4294967295, %s434_s15   ;;  %s312_s17 = sadd.s32 4294967294, %s434_s15   ;;  %s434_s15 = sphi %s465_s15, %s562_s15   ;;  %s430_s14 = sphi %s463_s14, %s561_s14   ;;  %s426_s13 = sphi %s461_s13, %s560_s13   ;;  %s422_s12 = sphi %s459_s12, %s559_s12  }
   0x4   : > { %s484_s18 = sadd.s32 1, %s434_s15   ;;  %s91_s19 = sadd.s32 1, %s430_s14 }
   0x5   : > { %s88_s20 = ssub.s32 %s434_s15, %s484_s18  ;;  %p101_p0 = scmp.ne.s32.totalorder %s430_s14, %s426_s13 }
   0x6   : > { %p89_p1 = scmp.eq.s32.totalorder %s88_s20, 0  ;;  %p102_p2 = scmp.eq.s32.totalorder %s480_s16, 1 }
   0x7   : > { %p107_p3 = scmp.ne.s32.totalorder %s426_s13, %s422_s12  ;;  %p108_p4 = scmp.eq.s32.totalorder %s312_s17, 1 }
   0x8   : > { %s495_s21 = scalar_select %p89_p1, %s430_s14, %s91_s19  }
   0x9   : > { %p497_p5 = por %p102_p2, %p101_p0  ;;  %p501_p6 = por %p108_p4, %p107_p3 }
   0xa   : > { %p315_p7 = scmp.ge.s32.totalorder %s434_s15, 1  ;;  %p139_p8 = scmp.lt.s32.totalorder %s434_s15, 3 }
   0xc   : > { %p140_p9 = pnand %p315_p7, %p139_p8 }
   0xd   : > { %p162_p10 = scmp.lt.s32.totalorder (!%p140_p9), %s480_s16, 1  ;;  %s436_s29 = smov (!%p140_p9), 127  }
   0xe   : > { %143 = sbr.rel (%p140_p9) target bundleno = 428 (0x1ac), region = 32  ;;  %s437_s30 = smov (!%p140_p9), 1  }
   0xf   : > { %s159_s8 = sand.u32 (!%p140_p9), 1, %s426_s13   ;;  %s323_s10 = sshll.u32 (!%p140_p9), %s480_s16, 2 }
  0x10   : > { %s316_s9 = sshll.u32 (!%p140_p9), %s159_s8, 2  ;;  %s248_s19 = scalar_lea.hbm (!%p140_p9), %s556_s3, %s323_s10 }
  0x11   : > { %s161_s20 = scalar_lea.vmem (!%p140_p9), [#allocation2], %s316_s9 }
  0x13   : > { %s163_s24 = scalar_select %p162_p10, %s480_s16, 1  ;;  %v179_v1 = vld [vmem:[%s555_s2] sm:$0xf]  ;;  %v438_v2 = vmov 0   ;;  %vm176_vm0 = vcmask 121856   ;;  %vm171_vm1 = vcmask 7168  }
  0x14   : > { %368 = vset.pattern.permute.xlu1 %v438_v2  ;;  %369 = vset.pattern.permute.xlu0 %v438_v2  ;;  %vm319_vm2 = vmneg %vm171_vm1  ;;  %v178_v4 = vld [vmem:[%s554_s1] sm:$0xf]  ;;  %vm185_vm3 = vcmask 195584   ;;  %vm209_vm4 = vcmask 125952   ;;  %s238_s16 = scalar_lea.sflag [#allocation3], %s159_s8 }
  0x15   : > { %s317_s25 = sshll.u32 %s163_s24, 3  ;;  %182 = vperm.xlu1 %368, %v179_v1   ;;  %s250_s24 = sshll.u32 %s161_s20, 4  ;;  %s251_s24 = int_to_ptr.vmem [resolvable:$true] %s250_s24 }
  0x16   : > { %s165_s28 = scalar_lea.vmem %s553_s0, %s317_s25  ;;  %s252_s25 = sshll.u32 %s248_s19, 4  ;;  %s253_s25 = int_to_ptr.hbm [resolvable:$true] %s252_s25 }
  0x17   : > { %v166_v0 = vld [vmem:[%s165_s28] sm:$0xff]  ;;  %s386_s26 = sshra.s32 %s253_s25, 4  ;;  %s387_s26 = int_to_ptr.hbm [resolvable:$true] %s386_s26 }
  0x18   : > { %173 = vrot.lane.b32.xlu0 %v166_v0, %s436_s29  ;;  %s388_s27 = scalar_lea.hbm %s387_s26, 4  ;;  %p393_p0 = scmp.lt.s32.totalorder %s387_s26, %s556_s3 }
  0x19   : > { %p389_p11 = scmp.ne.s32.totalorder %s387_s26, %s388_s27 }
  0x1b   : > { %p390_p12 = pnand %p389_p11, %p497_p5 }
  0x1d   : > { %p391_p13 = pneg %p390_p12 }
  0x20   : > { %168 = vrot.lane.b32.xlu0 %v166_v0, %s437_s30  ;;  %s392_s30 = scalar_lea.hbm %s556_s3, 8 }
  0x21   : > { %p394_p1 = scmp.lt.s32.totalorder %s392_s30, %s388_s27 }
  0x23   : > { %p395_p2 = por %p394_p1, %p393_p0 }
  0x25   : > { %p396_p3 = pnand %p395_p2, %p391_p13 }
  0x87   : > { %v183_v6 = vpop.permute.xlu1 %182 }
  0x8a   : > { %v174_v3 = vpop.permute.xlu0 %173 }
  0x8b   : > { %318 = vmatpush.msk.msra.mxu0 %vm176_vm0, %v174_v3 }
  0x8d   : > { %203 = vmatpush.msra.mxu0 %v166_v0 }
  0x92   : > { %v169_v5 = vpop.permute.xlu0 %168 }
  0x93   : > { %320 = vmatpush.msk.msra.mxu0 %vm319_vm2, %v169_v5 }
  0x94   : > { %321 = vmatmul.msk.f32.vlgmr.msra.gmra.mxu0 %vm185_vm3, %v178_v4 }
 0x111   : > { %v206_v7 = vpop.f32.mrf.mxu0 }
 0x112   : > { %v207_v8 = vadd.f32 %v206_v7, %v183_v6 }
 0x114   : > { %v210_v9 = vsel %vm209_vm4, %v207_v8, 0.0  ;;  %v213_v10 = vmul.f32 %v207_v8, %v207_v8 }
 0x115   : > { %211 = vadd.xlane.f32.xlu1 %v210_v9 }
 0x116   : > { %v214_v11 = vsel %vm209_vm4, %v213_v10, 0.0 }
 0x117   : > { %215 = vadd.xlane.f32.xlu2 %v214_v11 }
 0x188   : > { %v212_v12 = vpop.xlane.xlu1 %211 }
 0x189   : > { %v217_v13 = vmul.f32 0.0625, %v212_v12 }
 0x18a   : > { %v216_v14 = vpop.xlane.xlu2 %215 }
 0x18b   : > { %v219_v15 = vmul.f32 %v217_v13, %v217_v13  ;;  %v218_v16 = vmul.f32 0.0625, %v216_v14  ;;  %v222_v26 = vsub.f32 %v207_v8, %v217_v13 }
 0x18d   : > { %v220_v17 = vsub.f32 %v218_v16, %v219_v15 }
 0x18f   : > { %v221_v18 = vmax.f32 %v220_v17, 0.0 }
 0x191   : > { %v223_v19 = vadd.f32 1e-05, %v221_v18 }
 0x193   : > { %370 = vrsqrt.f32 %v223_v19  ;;  %vm230_vm6 = vweird.f32 %v223_v19 }
 0x199   : > { %v371_v20 = vpop.eup %370 }
 0x19a   : > { %v225_v21 = vmul.f32 %v371_v20, %v223_v19  ;;  %vm231_vm5 = vweird.f32 %v371_v20 }
 0x19b   : > { %vm232_vm7 = vmor %vm230_vm6, %vm231_vm5 }
 0x19c   : > { %v226_v22 = vmul.f32 %v371_v20, %v225_v21 }
 0x19e   : > { %v227_v23 = vmul.f32 0.5, %v226_v22 }
 0x1a0   : > { %v228_v24 = vsub.f32 1.5, %v227_v23 }
 0x1a2   : > { %v229_v25 = vmul.f32 %v371_v20, %v228_v24 }
 0x1a4   : > { %v233_v27 = vsel %vm232_vm7, %v371_v20, %v229_v25 }
 0x1a5   : > { %v234_v28 = vmul.f32 %v233_v27, %v222_v26 }
 0x1a7   : > { %v235_v29 = vmax.f32 %v234_v28, 0.0 }
 0x1a9   : > { %236 = vst.msk [vmem:[%s161_s20] sm:$0xf] %vm209_vm4, %v235_v29 }
 0x1aa   : > { %399 = shalt.err (!%p396_p3)
}
 0x1ab   : > { %326 = dma.vmem_to_hbm [thread:$0]  (%p497_p5), %s251_s24, 64, %s253_s25, %s238_s16  }
 0x1ac PF: > { %p332_p4 = scmp.ge.s32.totalorder %s434_s15, 2  ;;  %s264_s6 = sand.u32 1, %s422_s12  }
 0x1ad   : > { %s265_s7 = scalar_lea.sflag [#allocation3], %s264_s6 }
 0x1ae   : > { %p329_p7 = pnand %p332_p4, %p501_p6 }
 0x1b0   : > { %p330_p8 = pneg %p329_p7 }
 0x1b2   : > { %417 = dma.done.wait (%p330_p8), %s265_s7, 64  }
 0x1b3   : > { %419 = vsyncadd (%p330_p8), %s265_s7, 4294967232  ;;  %p13_p9 = scmp.ge.s32.totalorder %s484_s18, 4   ;;  %s559_s12 = smov %s426_s13 }
 0x1b4   : > { %s560_s13 = smov %s430_s14  ;;  %s561_s14 = smov %s495_s21 }
 0x1b5   : > { %s562_s15 = smov %s484_s18  ;;  %15 = sbr.rel (!%p13_p9) target bundleno = 3 (0x3), region = 67 }
 0x1ba   :  { %271 = vsyncpa [#allocation3], 1 }
 0x1bb   :  { %273 = vsyncpa [#allocation3 + $0x1], 1 }

</bundles_post_ra>
